<compile_context>
chip_gen: v6e
topology: v6e:2x2x1
jax: 0.10.0
libtpu: 0.0.40
codegen_flags: <defaults>
</compile_context>

<pallas_src>
import functools

import jax
import jax.numpy as jnp
from jax.experimental import pallas as pl
from jax.experimental.pallas import tpu as pltpu


def _round_up(x, m):
    return ((x + m - 1) // m) * m


def _pick_batch_tile(batch):
    """Multiple of 8, ~512-1024 rows per step, >=2 grid steps once the batch is big enough
    (so both v7x TensorCores get work via the "parallel" batch axis)."""
    if batch < 128:
        return _round_up(batch, 8)
    n_steps = max(2, -(-batch // 1024))
    return _round_up(-(-batch // n_steps), 8)


def _vmem_budget_bytes(tb, in_dim, h1p, h2p, out_dim, w_itemsize):
    """Rough audit of double-buffered tiles + intermediates (f32 + bf16 copy)."""
    x_tiles = 2 * tb * in_dim * w_itemsize
    out_tiles = 2 * tb * out_dim * 4
    w_bytes = 2 * (in_dim * h1p + h1p * h2p + h2p * out_dim) * w_itemsize
    b_bytes = 2 * (2 * max(h1p, h2p) + 128) * 4
    inter = tb * (h1p + h2p) * 6
    return x_tiles + out_tiles + w_bytes + b_bytes + inter


def _mlp_kernel(x_ref, w1_ref, w2_ref, w3_ref, b12_ref, b3_ref, o_ref, *, h1p, h2p):
    """Fused MLP forward for one batch tile. Everything lives in VMEM."""
    w_dtype = w1_ref.dtype
    x = x_ref[...]

    b1 = b12_ref[0:1, 0:h1p]
    b2 = b12_ref[1:2, 0:h2p]

    # Layer 1: Linear -> ReLU   (BN folded into layer-2 weights; Dropout eval = identity)
    h = jnp.dot(x, w1_ref[...], preferred_element_type=jnp.float32) + b1
    h = jnp.maximum(h, 0.0)

    # Layer 2: Linear -> ReLU   (BN folded into output-layer weights)
    h = jnp.dot(h.astype(w_dtype), w2_ref[...], preferred_element_type=jnp.float32) + b2
    h = jnp.maximum(h, 0.0)

    # Output layer: Linear
    o = jnp.dot(h.astype(w_dtype), w3_ref[...], preferred_element_type=jnp.float32) + b3_ref[...]
    o_ref[...] = o.astype(o_ref.dtype)


def base_model_forward(x, packed, *, batch_tile=None):
    """Run the fused MLP Pallas kernel.

    x: [B, input_dim] float32
    packed: dict from fold_and_pack_params (bf16 weights, folded BN, padded hidden dims).
    """
    B, in_dim = x.shape
    w1, w2, w3 = packed["w1"], packed["w2"], packed["w3"]
    b12, b3 = packed["b12"], packed["b3"]
    h1p, h2p = w1.shape[1], w2.shape[1]
    out_dim = w3.shape[1]
    compute_dtype = w1.dtype

    tb = _pick_batch_tile(B) if batch_tile is None else batch_tile
    Bp = _round_up(B, tb)
    grid = (Bp // tb,)

    xc = x.astype(compute_dtype)
    if Bp != B:
        xc = jnp.pad(xc, ((0, Bp - B), (0, 0)))

    kernel = functools.partial(_mlp_kernel, h1p=h1p, h2p=h2p)

    def rep(shape):
        # Replicated (grid-invariant) parameter tile.
        return pl.BlockSpec(shape, lambda i: (0, 0))

    in_specs = [
        pl.BlockSpec((tb, in_dim), lambda i: (i, 0)),   # x
        rep(w1.shape), rep(w2.shape), rep(w3.shape),     # weights (bf16, padded)
        rep(b12.shape), rep(b3.shape),                   # packed biases (f32)
    ]
    out_spec = pl.BlockSpec((tb, out_dim), lambda i: (i, 0))

    flops = 2 * Bp * (in_dim * h1p + h1p * h2p + h2p * out_dim)
    bytes_accessed = (xc.size * xc.dtype.itemsize
                      + sum(int(a.size) * a.dtype.itemsize for a in (w1, w2, w3, b12, b3))
                      + Bp * out_dim * 4)
    cost = pl.CostEstimate(flops=flops, transcendentals=0, bytes_accessed=bytes_accessed)

    cp_kwargs = dict(dimension_semantics=("parallel",))
    budget = _vmem_budget_bytes(tb, in_dim, h1p, h2p, out_dim, jnp.dtype(compute_dtype).itemsize)
    if budget > 12 * 1024 * 1024:   # only override when approaching the default scoped limits
        cp_kwargs["vmem_limit_bytes"] = min(int(budget * 1.4), 64 * 1024 * 1024)

    out = pl.pallas_call(
        kernel,
        out_shape=jax.ShapeDtypeStruct((Bp, out_dim), jnp.float32),
        grid_spec=pltpu.PrefetchScalarGridSpec(
            num_scalar_prefetch=0,
            grid=grid,
            in_specs=in_specs,
            out_specs=out_spec,
        ),
        compiler_params=pltpu.CompilerParams(**cp_kwargs),
        cost_estimate=cost,
    )(xc, w1, w2, w3, b12, b3)

    return out[:B] if Bp != B else out


def init_params(key, input_dim, output_dim, hidden_dims=(64, 32), eps=1e-5):
    """Deterministic init mirroring PyTorch's shapes.

    Linear weights stored transposed: [in, out]. BatchNorm1d at fresh init
    (gamma=1, beta=0, running_mean=0, running_var=1); eval mode uses running stats.
    """
    h1, h2 = hidden_dims
    k1, k2, k3, k4, k5, k6 = jax.random.split(key, 6)

    def linear_init(kw, kb, fan_in, fan_out):
        bound = 1.0 / jnp.sqrt(fan_in)
        w = jax.random.uniform(kw, (fan_in, fan_out), jnp.float32, -bound, bound)
        b = jax.random.uniform(kb, (1, fan_out), jnp.float32, -bound, bound)
        return w, b

    w1, b1 = linear_init(k1, k2, input_dim, h1)
    w2, b2 = linear_init(k3, k4, h1, h2)
    w3, b3 = linear_init(k5, k6, h2, output_dim)

    def bn(dim):
        return dict(gamma=jnp.ones((dim,), jnp.float32),
                    beta=jnp.zeros((dim,), jnp.float32),
                    mean=jnp.zeros((dim,), jnp.float32),
                    var=jnp.ones((dim,), jnp.float32))

    return dict(w1=w1, b1=b1, w2=w2, b2=b2, w3=w3, b3=b3,
                bn1=bn(h1), bn2=bn(h2), eps=eps)


def fold_and_pack_params(raw, *, compute_dtype=jnp.bfloat16, lane=128):
    """Fold eval-mode BN into the next layer, pad hidden dims to 128 lanes (zero rows/cols),
    cast the matmul path to bf16 and pack the two hidden-layer biases into one array."""
    eps = raw["eps"]

    def bn_scale_shift(bn):
        scale = bn["gamma"] / jnp.sqrt(bn["var"] + eps)
        shift = bn["beta"] - bn["mean"] * scale
        return scale, shift

    s1, t1 = bn_scale_shift(raw["bn1"])
    s2, t2 = bn_scale_shift(raw["bn2"])

    w1, b1 = raw["w1"], raw["b1"]
    w2 = raw["w2"] * s1[:, None]
    b2 = t1[None, :] @ raw["w2"] + raw["b2"]
    w3 = raw["w3"] * s2[:, None]
    b3 = t2[None, :] @ raw["w3"] + raw["b3"]

    in_dim, h1 = w1.shape
    h2 = w2.shape[1]
    out_dim = w3.shape[1]
    h1p = _round_up(h1, lane)
    h2p = _round_up(h2, lane)

    def pad2(a, rows, cols):
        return jnp.pad(a, ((0, rows - a.shape[0]), (0, cols - a.shape[1])))

    w1p = pad2(w1, in_dim, h1p)
    w2p = pad2(w2, h1p, h2p)       # padded rows are zero -> padded h1 lanes contribute nothing
    w3p = pad2(w3, h2p, out_dim)
    b1p = pad2(b1, 1, h1p)
    b2p = pad2(b2, 1, h2p)

    hmax = max(h1p, h2p)
    b12 = jnp.concatenate([pad2(b1p, 1, hmax), pad2(b2p, 1, hmax)], axis=0)

    return dict(
        w1=w1p.astype(compute_dtype),
        w2=w2p.astype(compute_dtype),
        w3=w3p.astype(compute_dtype),
        b12=b12.astype(jnp.float32),   # biases kept in f32 (added to f32 accumulators)
        b3=b3.astype(jnp.float32),
    )


def reference_forward(x, raw):
    """Plain-JAX f32 reference of BaseModel.eval() forward (BN uses running stats)."""
    eps = raw["eps"]

    def bn(h, p):
        return (h - p["mean"]) / jnp.sqrt(p["var"] + eps) * p["gamma"] + p["beta"]

    h = jnp.maximum(x @ raw["w1"] + raw["b1"], 0.0)
    h = bn(h, raw["bn1"])                       # Dropout(0.2) is identity in eval mode
    h = jnp.maximum(h @ raw["w2"] + raw["b2"], 0.0)
    h = bn(h, raw["bn2"])
    return h @ raw["w3"] + raw["b3"]


def reference_forward_matched(x, packed):
    """Same math as the kernel (folded BN, padded dims, bf16 matmuls, f32 accumulate)."""
    cd = packed["w1"].dtype
    h1p = packed["w1"].shape[1]
    h2p = packed["w2"].shape[1]
    b1 = packed["b12"][0:1, :h1p]
    b2 = packed["b12"][1:2, :h2p]
    h = jnp.maximum(jnp.dot(x.astype(cd), packed["w1"],
                            preferred_element_type=jnp.float32) + b1, 0.0)
    h = jnp.maximum(jnp.dot(h.astype(cd), packed["w2"],
                            preferred_element_type=jnp.float32) + b2, 0.0)
    return jnp.dot(h.astype(cd), packed["w3"],
                   preferred_element_type=jnp.float32) + packed["b3"]


if __name__ == "__main__":
    key = jax.random.PRNGKey(0)
    k_param, k_x = jax.random.split(key)

    batch = 8
    input_dim = 32
    output_dim = 8
    hidden_dims = (64, 32)

    raw = init_params(k_param, input_dim, output_dim, hidden_dims)
    packed = fold_and_pack_params(raw, compute_dtype=jnp.bfloat16)

    x = jax.random.normal(k_x, (batch, input_dim), jnp.float32)

    out = base_model_forward(x, packed)
    out = jax.block_until_ready(out)
    assert out.shape == (batch, output_dim)

    # Tight check against a reference doing the exact same (folded / padded / bf16) math.
    ref_matched = reference_forward_matched(x, packed)
    assert jnp.allclose(out, ref_matched, atol=1e-3, rtol=1e-3), \
        float(jnp.max(jnp.abs(out - ref_matched)))

    # Semantics check against the true f32 eval-mode forward (bf16-appropriate tolerance).
    ref_f32 = reference_forward(x, raw)
    assert jnp.allclose(out, ref_f32, atol=3e-2, rtol=3e-2), \
        float(jnp.max(jnp.abs(out - ref_f32)))

    print("KERNEL_OK")
</pallas_src>

<mosaic_0001>
module attributes {stable_mosaic.version = 11 : i64} {
  func.func @_mlp_kernel(%arg0: i32, %arg1: memref<8x32xbf16, #tpu.memory_space<vmem>>, %arg2: memref<32x128xbf16, #tpu.memory_space<vmem>>, %arg3: memref<128x128xbf16, #tpu.memory_space<vmem>>, %arg4: memref<128x8xbf16, #tpu.memory_space<vmem>>, %arg5: memref<2x128xf32, #tpu.memory_space<vmem>>, %arg6: memref<1x8xf32, #tpu.memory_space<vmem>>, %arg7: memref<8x8xf32, #tpu.memory_space<vmem>>) attributes {dimension_semantics = [#tpu.dimension_semantics<parallel>], iteration_bounds = array<i64: 1>, scalar_prefetch = 0 : i64, scratch_operands = 0 : i64, tpu.core_type = #tpu.core_type<tc>, window_params = [{transform_indices = @transform_0, window_bounds = array<i64: 8, 32>}, {pipeline_mode = #tpu.pipeline_mode<synchronous>, transform_indices = @transform_1, window_bounds = array<i64: 32, 128>}, {pipeline_mode = #tpu.pipeline_mode<synchronous>, transform_indices = @transform_2, window_bounds = array<i64: 128, 128>}, {pipeline_mode = #tpu.pipeline_mode<synchronous>, transform_indices = @transform_3, window_bounds = array<i64: 128, 8>}, {pipeline_mode = #tpu.pipeline_mode<synchronous>, transform_indices = @transform_4, window_bounds = array<i64: 2, 128>}, {pipeline_mode = #tpu.pipeline_mode<synchronous>, transform_indices = @transform_5, window_bounds = array<i64: 1, 8>}, {transform_indices = @transform_6, window_bounds = array<i64: 8, 8>}]} {
    %c0 = arith.constant 0 : index
    %c0_0 = arith.constant 0 : index
    %0 = vector.load %arg1[%c0, %c0_0] : memref<8x32xbf16, #tpu.memory_space<vmem>>, vector<8x32xbf16>
    %c0_1 = arith.constant 0 : index
    %c0_2 = arith.constant 0 : index
    %1 = vector.load %arg5[%c0_1, %c0_2] : memref<2x128xf32, #tpu.memory_space<vmem>>, vector<1x128xf32>
    %c1 = arith.constant 1 : index
    %c0_3 = arith.constant 0 : index
    %2 = vector.load %arg5[%c1, %c0_3] : memref<2x128xf32, #tpu.memory_space<vmem>>, vector<1x128xf32>
    %c0_4 = arith.constant 0 : index
    %c0_5 = arith.constant 0 : index
    %3 = vector.load %arg2[%c0_4, %c0_5] : memref<32x128xbf16, #tpu.memory_space<vmem>>, vector<32x128xbf16>
    %cst = arith.constant dense<0.000000e+00> : vector<8x128xf32>
    %4 = tpu.matmul %0, %3, %cst {dimension_numbers = #tpu.dot_dimension_numbers<[1], [0], [0], [1], [0, 0, 1, 1], [], []>} : vector<8x32xbf16>, vector<32x128xbf16>, vector<8x128xf32> -> vector<8x128xf32>
    %5 = vector.broadcast %1 : vector<1x128xf32> to vector<8x128xf32>
    %6 = arith.addf %4, %5 : vector<8x128xf32>
    %cst_6 = arith.constant 0.000000e+00 : f32
    %7 = vector.broadcast %cst_6 : f32 to vector<8x128xf32>
    %8 = arith.maximumf %6, %7 : vector<8x128xf32>
    %9 = arith.truncf %8 : vector<8x128xf32> to vector<8x128xbf16>
    %c0_7 = arith.constant 0 : index
    %c0_8 = arith.constant 0 : index
    %10 = vector.load %arg3[%c0_7, %c0_8] : memref<128x128xbf16, #tpu.memory_space<vmem>>, vector<128x128xbf16>
    %cst_9 = arith.constant dense<0.000000e+00> : vector<8x128xf32>
    %11 = tpu.matmul %9, %10, %cst_9 {dimension_numbers = #tpu.dot_dimension_numbers<[1], [0], [0], [1], [0, 0, 1, 1], [], []>} : vector<8x128xbf16>, vector<128x128xbf16>, vector<8x128xf32> -> vector<8x128xf32>
    %12 = vector.broadcast %2 : vector<1x128xf32> to vector<8x128xf32>
    %13 = arith.addf %11, %12 : vector<8x128xf32>
    %cst_10 = arith.constant 0.000000e+00 : f32
    %14 = vector.broadcast %cst_10 : f32 to vector<8x128xf32>
    %15 = arith.maximumf %13, %14 : vector<8x128xf32>
    %16 = arith.truncf %15 : vector<8x128xf32> to vector<8x128xbf16>
    %c0_11 = arith.constant 0 : index
    %c0_12 = arith.constant 0 : index
    %17 = vector.load %arg4[%c0_11, %c0_12] : memref<128x8xbf16, #tpu.memory_space<vmem>>, vector<128x8xbf16>
    %cst_13 = arith.constant dense<0.000000e+00> : vector<8x8xf32>
    %18 = tpu.matmul %16, %17, %cst_13 {dimension_numbers = #tpu.dot_dimension_numbers<[1], [0], [0], [1], [0, 0, 1, 1], [], []>} : vector<8x128xbf16>, vector<128x8xbf16>, vector<8x8xf32> -> vector<8x8xf32>
    %c0_14 = arith.constant 0 : index
    %c0_15 = arith.constant 0 : index
    %19 = vector.load %arg6[%c0_14, %c0_15] : memref<1x8xf32, #tpu.memory_space<vmem>>, vector<1x8xf32>
    %20 = vector.broadcast %19 : vector<1x8xf32> to vector<8x8xf32>
    %21 = arith.addf %18, %20 : vector<8x8xf32>
    %c0_16 = arith.constant 0 : index
    %c0_17 = arith.constant 0 : index
    %22 = vector.load %arg7[%c0_16, %c0_17] : memref<8x8xf32, #tpu.memory_space<vmem>>, vector<8x8xf32>
    tpu.vector_store %arg7[%c0_16, %c0_17], %21 {strides = array<i32>} : memref<8x8xf32, #tpu.memory_space<vmem>>, vector<8x8xf32>,
    return
  }
  func.func @transform_0(%arg0: i32) -> (i32, i32) {
    %c0_i32 = arith.constant 0 : i32
    %c0_i32_0 = arith.constant 0 : i32
    return %arg0, %c0_i32 : i32, i32
  }
  func.func @transform_1(%arg0: i32) -> (i32, i32) {
    %c0_i32 = arith.constant 0 : i32
    %c0_i32_0 = arith.constant 0 : i32
    %c0_i32_1 = arith.constant 0 : i32
    return %c0_i32, %c0_i32_0 : i32, i32
  }
  func.func @transform_2(%arg0: i32) -> (i32, i32) {
    %c0_i32 = arith.constant 0 : i32
    %c0_i32_0 = arith.constant 0 : i32
    %c0_i32_1 = arith.constant 0 : i32
    return %c0_i32, %c0_i32_0 : i32, i32
  }
  func.func @transform_3(%arg0: i32) -> (i32, i32) {
    %c0_i32 = arith.constant 0 : i32
    %c0_i32_0 = arith.constant 0 : i32
    %c0_i32_1 = arith.constant 0 : i32
    return %c0_i32, %c0_i32_0 : i32, i32
  }
  func.func @transform_4(%arg0: i32) -> (i32, i32) {
    %c0_i32 = arith.constant 0 : i32
    %c0_i32_0 = arith.constant 0 : i32
    %c0_i32_1 = arith.constant 0 : i32
    return %c0_i32, %c0_i32_0 : i32, i32
  }
  func.func @transform_5(%arg0: i32) -> (i32, i32) {
    %c0_i32 = arith.constant 0 : i32
    %c0_i32_0 = arith.constant 0 : i32
    %c0_i32_1 = arith.constant 0 : i32
    return %c0_i32, %c0_i32_0 : i32, i32
  }
  func.func @transform_6(%arg0: i32) -> (i32, i32) {
    %c0_i32 = arith.constant 0 : i32
    %c0_i32_0 = arith.constant 0 : i32
    return %arg0, %c0_i32 : i32, i32
  }
}

</mosaic_0001>

<bundles_post_ra>
// kernel: tpu_custom_call.1
= control target key start
LH: loop header
LB: loop body
LE: loop exit
PB: predicated region body
PF: predicated region fallthrough
CT: control target
= control target key end

     0   :  { %11 = vsyncpa [#allocation3], 0  ;;  %s636_s0 = inlined_call_operand.vmem [shape: bf16[8,32], index: 0, kind: input, shape index: {}]   ;;  %s637_s1 = inlined_call_operand.hbm [shape: bf16[32,128], index: 1, kind: input, shape index: {}]   ;;  %s638_s2 = inlined_call_operand.vmem [shape: bf16[128,128], index: 2, kind: input, shape index: {}]   ;;  %s639_s3 = inlined_call_operand.vmem [shape: bf16[128,8], index: 3, kind: input, shape index: {}]   ;;  %s640_s4 = inlined_call_operand.vmem [shape: f32[2,128], index: 4, kind: input, shape index: {}]   ;;  %s641_s5 = inlined_call_operand.vmem [shape: f32[1,8], index: 5, kind: input, shape index: {}]   ;;  %s642_s6 = inlined_call_operand.hbm [shape: f32[8,8], index: 6, kind: output, shape index: {}]  }
   0x1   :  { %12 = vsyncpa [#allocation4], 0  ;;  %s505_s21 = smov [#allocation2]  }
   0x2   :  { %s20_s22 = sshll.u32 %s505_s21, 4  ;;  %s21_s22 = int_to_ptr.vmem [resolvable:$true] %s20_s22 }
   0x3   :  { %s469_s23 = scalar_lea.vmem %s21_s22, 256  ;;  %p474_p1 = scmp.lt.s32.totalorder %s21_s22, %s21_s22 }
   0x4   :  { %p470_p0 = scmp.ne.s32.totalorder %s21_s22, %s469_s23  ;;  %p475_p2 = scmp.lt.s32.totalorder %s469_s23, %s469_s23 }
   0x6   :  { %p476_p3 = por %p475_p2, %p474_p1 }
   0x8   :  { %p477_p4 = pnand %p476_p3, %p470_p0 }
   0xa   :  { %480 = shalt.err (!%p477_p4)
}
   0xb   :  { %s506_s24 = smov 64   ;;  %s507_s25 = smov 4  }
   0xc   :  { %26 = dma.hbm_to_vmem [thread:$0]  %s637_s1, 256, %s21_s22, [#allocation3], %s506_s24, %s506_s24, %s507_s25  }
   0xd   :  { %501 = dma.done.wait [#allocation3], 256  }
   0xe   :  { %502 = vsyncadd [#allocation3], 4294967040  ;;  %v508_v0 = vmov 0.0   ;;  %vm509_vm0 = vmmov 0   ;;  %v443_v1 = vld [vmem:[#allocation2 + $0x8] sm:$0xff]   ;;  %v444_v2 = vld [vmem:[#allocation2] sm:$0xff]  }
   0xf   :  { %389 = vmatprep.subr.bf16.mxu0 %v508_v0  ;;  %393 = vmatprep.mubr.msk.bf16.mxu0 %vm509_vm0, %v508_v0  ;;  %v445_v3 = vld [vmem:[%s638_s2 + $0x38] sm:$0xff]   ;;  %vm62_vm1 = vcmask 261120   ;;  %v446_v4 = vld [vmem:[%s638_s2 + $0x30] sm:$0xff]   ;;  %v39_v5 = vld [vmem:[%s636_s0] sm:$0xf]  ;;  %s510_s15 = smov [#allocation5]  }
  0x10   :  { %397 = vmatprep.subr.bf16.mxu1 %v508_v0  ;;  %413 = vmatprep.mubr.msk.bf16.mxu1 %vm509_vm0, %v508_v0  ;;  %v447_v6 = vld [vmem:[%s638_s2 + $0x28] sm:$0xff]   ;;  %v448_v7 = vld [vmem:[%s638_s2 + $0x20] sm:$0xff]   ;;  %v449_v8 = vld [vmem:[%s638_s2 + $0x18] sm:$0xff]   ;;  %s337_s16 = sshll.u32 %s510_s15, 4  ;;  %vm329_vm2 = vcmask 64512   ;;  %s338_s16 = int_to_ptr.vmem [resolvable:$true] %s337_s16 }
  0x11   :  { %390 = vmatpush3.bf16.msra.mxu0 %v443_v1  ;;  %398 = vmatpush3.bf16.msra.mxu1 %v445_v3  ;;  %v450_v9 = vld [vmem:[%s638_s2 + $0x10] sm:$0xff]   ;;  %v451_v10 = vld [vmem:[%s638_s2 + $0x8] sm:$0xff]   ;;  %v452_v11 = vld [vmem:[%s638_s2] sm:$0xff]   ;;  %p486_p6 = scmp.lt.s32.totalorder %s338_s16, %s338_s16 }
  0x12   :  { %391 = vmatprep.subr.bf16.mxu0 %v508_v0  ;;  %399 = vmatprep.subr.bf16.mxu1 %v508_v0  ;;  %v453_v12 = vld [vmem:[%s639_s3 + $0x38] sm:$0xff]   ;;  %v454_v13 = vld [vmem:[%s639_s3 + $0x30] sm:$0xff]   ;;  %v455_v14 = vld [vmem:[%s639_s3 + $0x28] sm:$0xff]  }
  0x13   :  { %v456_v15 = vld [vmem:[%s639_s3 + $0x20] sm:$0xff]   ;;  %v457_v16 = vld [vmem:[%s639_s3 + $0x18] sm:$0xff]   ;;  %v458_v17 = vld [vmem:[%s639_s3 + $0x10] sm:$0xff]  }
  0x14   :  { %v346_v18 = vld [vmem:[%s640_s4] ss:$0 sm:$0xff]  ;;  %v459_v26 = vld [vmem:[%s639_s3 + $0x8] sm:$0xff]   ;;  %v350_v28 = vld [vmem:[%s640_s4 + $0x1] ss:$0 sm:$0xff] }
  0x15   :  { %392 = vmatpush3.bf16.msra.mxu0 %v444_v2  ;;  %400 = vmatpush3.bf16.msra.mxu1 %v446_v4  ;;  %v460_v27 = vld [vmem:[%s639_s3] sm:$0xff]   ;;  %s481_s3 = scalar_lea.vmem %s338_s16, 128 }
  0x16   :  { %417 = vmatprep.subr.bf16.mxu0 %v508_v0  ;;  %401 = vmatprep.subr.bf16.mxu1 %v508_v0  ;;  %v359_v36 = vld [vmem:[%s641_s5] ss:$0 sm:$0xff]  ;;  %p482_p5 = scmp.ne.s32.totalorder %s338_s16, %s481_s3  ;;  %p487_p7 = scmp.lt.s32.totalorder %s481_s3, %s481_s3 }
  0x18   :  { %394 = vmatmul.mubr.msk.bf16.vlgmr.msra.gmra.mxu0 %vm62_vm1, %v39_v5  ;;  %p488_p8 = por %p487_p7, %p486_p6 }
  0x19   :  { %433 = vmatprep.mubr.msk.bf16.mxu0 %vm509_vm0, %v508_v0  ;;  %402 = vmatpush3.bf16.msra.mxu1 %v447_v6 }
  0x1a   :  { %403 = vmatprep.subr.bf16.mxu1 %v508_v0  ;;  %418 = vmatpush3.bf16.msra.mxu0 %v453_v12  ;;  %p489_p9 = pnand %p488_p8, %p482_p5 }
  0x1b   :  { %419 = vmatprep.subr.bf16.mxu0 %v508_v0 }
  0x1d   :  { %404 = vmatpush3.bf16.msra.mxu1 %v448_v7 }
  0x1e   :  { %405 = vmatprep.subr.bf16.mxu1 %v508_v0  ;;  %420 = vmatpush3.bf16.msra.mxu0 %v454_v13 }
  0x1f   :  { %421 = vmatprep.subr.bf16.mxu0 %v508_v0 }
  0x21   :  { %406 = vmatpush3.bf16.msra.mxu1 %v449_v8 }
  0x22   :  { %407 = vmatprep.subr.bf16.mxu1 %v508_v0  ;;  %422 = vmatpush3.bf16.msra.mxu0 %v455_v14 }
  0x23   :  { %423 = vmatprep.subr.bf16.mxu0 %v508_v0 }
  0x25   :  { %408 = vmatpush3.bf16.msra.mxu1 %v450_v9 }
  0x26   :  { %409 = vmatprep.subr.bf16.mxu1 %v508_v0  ;;  %424 = vmatpush3.bf16.msra.mxu0 %v456_v15 }
  0x27   :  { %425 = vmatprep.subr.bf16.mxu0 %v508_v0 }
  0x29   :  { %410 = vmatpush3.bf16.msra.mxu1 %v451_v10 }
  0x2a   :  { %411 = vmatprep.subr.bf16.mxu1 %v508_v0  ;;  %426 = vmatpush3.bf16.msra.mxu0 %v457_v16 }
  0x2b   :  { %427 = vmatprep.subr.bf16.mxu0 %v508_v0 }
  0x2d   :  { %412 = vmatpush3.bf16.msra.mxu1 %v452_v11 }
  0x2e   :  { %428 = vmatpush3.bf16.msra.mxu0 %v458_v17 }
  0x2f   :  { %429 = vmatprep.subr.bf16.mxu0 %v508_v0 }
  0x32   :  { %430 = vmatpush3.bf16.msra.mxu0 %v459_v26 }
  0x33   :  { %431 = vmatprep.subr.bf16.mxu0 %v508_v0 }
  0x36   :  { %432 = vmatpush3.bf16.msra.mxu0 %v460_v27 }
  0xd8   :  { %v100_v19 = vpop.f32.mrf.mxu0 }
  0xd9   :  { %v101_v20 = vadd.f32 %v346_v18, %v100_v19 }
  0xda   :  { %v395_v21 = vpop.f32.mrf.mxu0 }
  0xdb   :  { %v106_v22 = vmax.f32 %v101_v20, 0.0 }
  0xdc   :  { %v103_v23 = vpop.f32.mrf.mxu0 }
  0xdd   :  { %v107_v24 = vpack.c.bf16 %v106_v22, %v106_v22 }
  0xde   :  { %v396_v25 = vpop.f32.mrf.mxu0 }
  0xdf   :  { %414 = vmatmul.mubr.bf16.vlgmr.msra.gmra.mxu1 %v107_v24 }
 0x19f   :  { %v210_v29 = vpop.f32.mrf.mxu1 }
 0x1a0   :  { %v211_v30 = vadd.f32 %v350_v28, %v210_v29 }
 0x1a1   :  { %v415_v31 = vpop.f32.mrf.mxu1 }
 0x1a2   :  { %v216_v32 = vmax.f32 %v211_v30, 0.0 }
 0x1a3   :  { %v213_v33 = vpop.f32.mrf.mxu1 }
 0x1a4   :  { %v217_v34 = vpack.c.bf16 %v216_v32, %v216_v32 }
 0x1a5   :  { %v416_v35 = vpop.f32.mrf.mxu1 }
 0x1a6   :  { %434 = vmatmul.mubr.bf16.vlgmr.msra.gmra.mxu0 %v217_v34 }
 0x266   :  { %v323_v37 = vpop.f32.mrf.mxu0 }
 0x267   :  { %v324_v38 = vadd.f32 %v359_v36, %v323_v37 }
 0x268   :  { %v435_v39 = vpop.f32.mrf.mxu0 }
 0x269   :  { %330 = vst.msk [vmem:[#allocation5] sm:$0xff] %vm329_vm2, %v324_v38 }
 0x26a   :  { %v326_v40 = vpop.f32.mrf.mxu0 }
 0x26b   :  { %492 = shalt.err (!%p489_p9)
}
 0x26c   :  { %340 = dma.vmem_to_hbm [thread:$0]  %s338_s16, 128, %s642_s6, [#allocation4]   ;;  %v436_v41 = vpop.f32.mrf.mxu0 }
 0x26d   :  { %503 = dma.done.wait [#allocation4], 128  }
 0x26e   :  { %504 = vsyncadd [#allocation4], 4294967168 }
 0x26f   :  { %344 = vsyncpa [#allocation3], 1 }
 0x270   :  { %345 = vsyncpa [#allocation4], 1 }

</bundles_post_ra>
